<compile_context>
chip_gen: v7x
topology: tpu7x:2x2x1
jax: 0.10.0
libtpu: 0.0.40
codegen_flags: <defaults>
</compile_context>

<pallas_src>
import functools

import jax
import jax.numpy as jnp
from jax import lax
from jax.experimental import pallas as pl
from jax.experimental.pallas import tpu as pltpu


LANE = 128  # TPU vreg lane width; the batch is laid out along lanes.


def mlp_kernel(x_ref, w1_ref, b1_ref, w2_ref, b2_ref, o_ref, *,
               hidden, chunk_rows):
    """Lane-dense 1 -> hidden -> 1 MLP.

    x_ref / o_ref : (tile_rows, 128) f32 VMEM tiles, batch along lanes.
    w1/b1/w2      : (hidden,) f32 in SMEM (scalar weights).
    b2            : (1,)      f32 in SMEM.
    """
    tile_rows = x_ref.shape[0]
    n_chunks = tile_rows // chunk_rows  # static; wrapper guarantees divisibility

    # Hoist scalar weight reads out of the row-chunk loop (loop-invariant).
    w1 = [w1_ref[j] for j in range(hidden)]
    b1 = [b1_ref[j] for j in range(hidden)]
    w2 = [w2_ref[j] for j in range(hidden)]
    b2 = b2_ref[0]

    def chunk_body(c, carry):
        r0 = pl.multiple_of(c * chunk_rows, chunk_rows)
        x = x_ref[pl.ds(r0, chunk_rows), :]            # (chunk_rows, 128)
        acc = jnp.full(x.shape, b2, dtype=jnp.float32)
        # in_features == 1 and out_features == 1 -> unrolled over hidden:
        #   y = b2 + sum_j sigmoid(x * w1[j] + b1[j]) * w2[j]
        for j in range(hidden):
            h = x * w1[j] + b1[j]                      # scalar-vector VPU ops
            s = 0.5 * jnp.tanh(0.5 * h) + 0.5          # sigmoid, one EUP push
            acc = acc + s * w2[j]
        o_ref[pl.ds(r0, chunk_rows), :] = acc.astype(o_ref.dtype)
        return carry

    lax.fori_loop(0, n_chunks, chunk_body, 0, unroll=False)


def mlp_forward(x, w1, b1, w2, b2, *, block_rows=512):
    """x: (B, 1), w1: (1, H), b1: (1, H), w2: (H, 1), b2: (1, 1) -> (B, 1)."""
    B, in_features = x.shape
    assert in_features == 1, in_features
    hidden = int(w1.size)
    assert int(b1.size) == hidden and int(w2.size) == hidden and int(b2.size) == 1

    dtype = x.dtype
    w1_v = w1.reshape(hidden).astype(jnp.float32)
    b1_v = b1.reshape(hidden).astype(jnp.float32)
    w2_v = w2.reshape(hidden).astype(jnp.float32)
    b2_v = b2.reshape(1).astype(jnp.float32)

    # Lane-dense layout: fold the batch onto the 128-wide lane axis.
    pad = (-B) % LANE
    if pad:  # only when B is not a multiple of 128 (reshape needs it)
        x = jnp.pad(x, ((0, pad), (0, 0)))
    rows = (B + pad) // LANE
    x2 = x.reshape(rows, LANE)

    # Per-grid-step row tile: as large as reasonable, sublane-aligned.
    tile_rows = min(block_rows, rows)
    if tile_rows < rows and tile_rows % 8 != 0:
        tile_rows = max(8, (tile_rows // 8) * 8)
    grid = (pl.cdiv(rows, tile_rows),)

    # In-kernel accumulation chunk: keeps live vregs to a handful per step.
    chunk_rows = tile_rows
    for cand in (32, 16, 8):
        if tile_rows % cand == 0:
            chunk_rows = cand
            break

    kernel = functools.partial(mlp_kernel, hidden=hidden, chunk_rows=chunk_rows)

    out2 = pl.pallas_call(
        kernel,
        out_shape=jax.ShapeDtypeStruct((rows, LANE), dtype),
        grid=grid,
        in_specs=[
            # x: streamed over the batch grid (double-buffered by BlockSpec).
            pl.BlockSpec((tile_rows, LANE), lambda i: (i, 0)),
            # Weights / biases: scalar operands resident in SMEM.
            pl.BlockSpec(memory_space=pltpu.MemorySpace.SMEM),   # w1
            pl.BlockSpec(memory_space=pltpu.MemorySpace.SMEM),   # b1
            pl.BlockSpec(memory_space=pltpu.MemorySpace.SMEM),   # w2
            pl.BlockSpec(memory_space=pltpu.MemorySpace.SMEM),   # b2
        ],
        out_specs=pl.BlockSpec((tile_rows, LANE), lambda i: (i, 0)),
        compiler_params=pltpu.CompilerParams(
            dimension_semantics=("parallel",),   # v7x: 2 TCs split the batch
        ),
    )(x2, w1_v, b1_v, w2_v, b2_v)

    y = out2.reshape(rows * LANE, 1)
    if pad:
        y = y[:B]
    return y.astype(dtype)


def init_params(key, input_size=1, hidden_size=10, output_size=1, dtype=jnp.float32):
    # Deterministic init mimicking nn.Linear's uniform(-1/sqrt(fan_in), 1/sqrt(fan_in)).
    k1, k2, k3, k4 = jax.random.split(key, 4)
    bound1 = 1.0 / jnp.sqrt(jnp.array(input_size, dtype))
    bound2 = 1.0 / jnp.sqrt(jnp.array(hidden_size, dtype))
    w1 = jax.random.uniform(k1, (input_size, hidden_size), dtype, -bound1, bound1)
    b1 = jax.random.uniform(k2, (1, hidden_size), dtype, -bound1, bound1)
    w2 = jax.random.uniform(k3, (hidden_size, output_size), dtype, -bound2, bound2)
    b2 = jax.random.uniform(k4, (1, output_size), dtype, -bound2, bound2)
    return w1, b1, w2, b2


def reference_forward(x, w1, b1, w2, b2):
    h = jax.nn.sigmoid(x @ w1 + b1)
    return h @ w2 + b2


if __name__ == "__main__":
    key = jax.random.PRNGKey(0)
    kx, kp = jax.random.split(key)

    # batch = 4096 -> 32 lane-dense rows of 128; block_rows=16 gives a 2-step
    # grid (exercises the pipeline and v7x's two TensorCores) with no padding.
    batch = 4096
    input_size, hidden_size, output_size = 1, 10, 1

    x = jax.random.normal(kx, (batch, input_size), jnp.float32)
    w1, b1, w2, b2 = init_params(kp, input_size, hidden_size, output_size)

    y = mlp_forward(x, w1, b1, w2, b2, block_rows=16)
    y = jax.block_until_ready(y)

    y_ref = reference_forward(x, w1, b1, w2, b2)
    assert y.shape == (batch, output_size), y.shape
    # tanh-form sigmoid is exact at f32; tight tolerance.
    assert jnp.allclose(y, y_ref, atol=1e-5, rtol=1e-5), (y, y_ref)

    print("KERNEL_OK")
</pallas_src>

<mosaic_0001>
module attributes {stable_mosaic.version = 11 : i64} {
  func.func @mlp_kernel(%arg0: i32, %arg1: memref<16x128xf32, #tpu.memory_space<vmem>>, %arg2: memref<10xf32, #tpu.memory_space<smem>>, %arg3: memref<10xf32, #tpu.memory_space<smem>>, %arg4: memref<10xf32, #tpu.memory_space<smem>>, %arg5: memref<1xf32, #tpu.memory_space<smem>>, %arg6: memref<16x128xf32, #tpu.memory_space<vmem>>) attributes {dimension_semantics = [#tpu.dimension_semantics<parallel>], iteration_bounds = array<i64: 2>, scalar_prefetch = 0 : i64, scratch_operands = 0 : i64, tpu.core_type = #tpu.core_type<tc>, window_params = [{transform_indices = @transform_0, window_bounds = array<i64: 16, 128>}, {transform_indices = @transform_1, window_bounds = array<i64: 10>}, {transform_indices = @transform_2, window_bounds = array<i64: 10>}, {transform_indices = @transform_3, window_bounds = array<i64: 10>}, {transform_indices = @transform_4, window_bounds = array<i64: 1>}, {transform_indices = @transform_5, window_bounds = array<i64: 16, 128>}]} {
    %c0 = arith.constant 0 : index
    %0 = memref.load %arg2[%c0] : memref<10xf32, #tpu.memory_space<smem>>
    %c1 = arith.constant 1 : index
    %1 = memref.load %arg2[%c1] : memref<10xf32, #tpu.memory_space<smem>>
    %c2 = arith.constant 2 : index
    %2 = memref.load %arg2[%c2] : memref<10xf32, #tpu.memory_space<smem>>
    %c3 = arith.constant 3 : index
    %3 = memref.load %arg2[%c3] : memref<10xf32, #tpu.memory_space<smem>>
    %c4 = arith.constant 4 : index
    %4 = memref.load %arg2[%c4] : memref<10xf32, #tpu.memory_space<smem>>
    %c5 = arith.constant 5 : index
    %5 = memref.load %arg2[%c5] : memref<10xf32, #tpu.memory_space<smem>>
    %c6 = arith.constant 6 : index
    %6 = memref.load %arg2[%c6] : memref<10xf32, #tpu.memory_space<smem>>
    %c7 = arith.constant 7 : index
    %7 = memref.load %arg2[%c7] : memref<10xf32, #tpu.memory_space<smem>>
    %c8 = arith.constant 8 : index
    %8 = memref.load %arg2[%c8] : memref<10xf32, #tpu.memory_space<smem>>
    %c9 = arith.constant 9 : index
    %9 = memref.load %arg2[%c9] : memref<10xf32, #tpu.memory_space<smem>>
    %c0_0 = arith.constant 0 : index
    %10 = memref.load %arg3[%c0_0] : memref<10xf32, #tpu.memory_space<smem>>
    %c1_1 = arith.constant 1 : index
    %11 = memref.load %arg3[%c1_1] : memref<10xf32, #tpu.memory_space<smem>>
    %c2_2 = arith.constant 2 : index
    %12 = memref.load %arg3[%c2_2] : memref<10xf32, #tpu.memory_space<smem>>
    %c3_3 = arith.constant 3 : index
    %13 = memref.load %arg3[%c3_3] : memref<10xf32, #tpu.memory_space<smem>>
    %c4_4 = arith.constant 4 : index
    %14 = memref.load %arg3[%c4_4] : memref<10xf32, #tpu.memory_space<smem>>
    %c5_5 = arith.constant 5 : index
    %15 = memref.load %arg3[%c5_5] : memref<10xf32, #tpu.memory_space<smem>>
    %c6_6 = arith.constant 6 : index
    %16 = memref.load %arg3[%c6_6] : memref<10xf32, #tpu.memory_space<smem>>
    %c7_7 = arith.constant 7 : index
    %17 = memref.load %arg3[%c7_7] : memref<10xf32, #tpu.memory_space<smem>>
    %c8_8 = arith.constant 8 : index
    %18 = memref.load %arg3[%c8_8] : memref<10xf32, #tpu.memory_space<smem>>
    %c9_9 = arith.constant 9 : index
    %19 = memref.load %arg3[%c9_9] : memref<10xf32, #tpu.memory_space<smem>>
    %c0_10 = arith.constant 0 : index
    %20 = memref.load %arg4[%c0_10] : memref<10xf32, #tpu.memory_space<smem>>
    %c1_11 = arith.constant 1 : index
    %21 = memref.load %arg4[%c1_11] : memref<10xf32, #tpu.memory_space<smem>>
    %c2_12 = arith.constant 2 : index
    %22 = memref.load %arg4[%c2_12] : memref<10xf32, #tpu.memory_space<smem>>
    %c3_13 = arith.constant 3 : index
    %23 = memref.load %arg4[%c3_13] : memref<10xf32, #tpu.memory_space<smem>>
    %c4_14 = arith.constant 4 : index
    %24 = memref.load %arg4[%c4_14] : memref<10xf32, #tpu.memory_space<smem>>
    %c5_15 = arith.constant 5 : index
    %25 = memref.load %arg4[%c5_15] : memref<10xf32, #tpu.memory_space<smem>>
    %c6_16 = arith.constant 6 : index
    %26 = memref.load %arg4[%c6_16] : memref<10xf32, #tpu.memory_space<smem>>
    %c7_17 = arith.constant 7 : index
    %27 = memref.load %arg4[%c7_17] : memref<10xf32, #tpu.memory_space<smem>>
    %c8_18 = arith.constant 8 : index
    %28 = memref.load %arg4[%c8_18] : memref<10xf32, #tpu.memory_space<smem>>
    %c9_19 = arith.constant 9 : index
    %29 = memref.load %arg4[%c9_19] : memref<10xf32, #tpu.memory_space<smem>>
    %c0_20 = arith.constant 0 : index
    %30 = memref.load %arg5[%c0_20] : memref<1xf32, #tpu.memory_space<smem>>
    %c0_i32 = arith.constant 0 : i32
    %c16_i32 = arith.constant 16 : i32
    %31 = arith.muli %c0_i32, %c16_i32 : i32
    %32 = tpu.assume_multiple %31, 16 : i32
    %33 = arith.index_cast %32 : i32 to index
    %c0_21 = arith.constant 0 : index
    %34 = vector.load %arg1[%33, %c0_21] : memref<16x128xf32, #tpu.memory_space<vmem>>, vector<16x128xf32>
    %35 = vector.broadcast %30 : f32 to vector<16x128xf32>
    %36 = vector.broadcast %0 : f32 to vector<16x128xf32>
    %37 = arith.mulf %34, %36 : vector<16x128xf32>
    %38 = vector.broadcast %10 : f32 to vector<16x128xf32>
    %39 = arith.addf %37, %38 : vector<16x128xf32>
    %cst = arith.constant 5.000000e-01 : f32
    %40 = vector.broadcast %cst : f32 to vector<16x128xf32>
    %41 = arith.mulf %40, %39 : vector<16x128xf32>
    %42 = math.tanh %41 : vector<16x128xf32>
    %cst_22 = arith.constant 5.000000e-01 : f32
    %43 = vector.broadcast %cst_22 : f32 to vector<16x128xf32>
    %44 = arith.mulf %43, %42 : vector<16x128xf32>
    %cst_23 = arith.constant 5.000000e-01 : f32
    %45 = vector.broadcast %cst_23 : f32 to vector<16x128xf32>
    %46 = arith.addf %44, %45 : vector<16x128xf32>
    %47 = vector.broadcast %20 : f32 to vector<16x128xf32>
    %48 = arith.mulf %46, %47 : vector<16x128xf32>
    %49 = arith.addf %35, %48 : vector<16x128xf32>
    %50 = vector.broadcast %1 : f32 to vector<16x128xf32>
    %51 = arith.mulf %34, %50 : vector<16x128xf32>
    %52 = vector.broadcast %11 : f32 to vector<16x128xf32>
    %53 = arith.addf %51, %52 : vector<16x128xf32>
    %cst_24 = arith.constant 5.000000e-01 : f32
    %54 = vector.broadcast %cst_24 : f32 to vector<16x128xf32>
    %55 = arith.mulf %54, %53 : vector<16x128xf32>
    %56 = math.tanh %55 : vector<16x128xf32>
    %cst_25 = arith.constant 5.000000e-01 : f32
    %57 = vector.broadcast %cst_25 : f32 to vector<16x128xf32>
    %58 = arith.mulf %57, %56 : vector<16x128xf32>
    %cst_26 = arith.constant 5.000000e-01 : f32
    %59 = vector.broadcast %cst_26 : f32 to vector<16x128xf32>
    %60 = arith.addf %58, %59 : vector<16x128xf32>
    %61 = vector.broadcast %21 : f32 to vector<16x128xf32>
    %62 = arith.mulf %60, %61 : vector<16x128xf32>
    %63 = arith.addf %49, %62 : vector<16x128xf32>
    %64 = vector.broadcast %2 : f32 to vector<16x128xf32>
    %65 = arith.mulf %34, %64 : vector<16x128xf32>
    %66 = vector.broadcast %12 : f32 to vector<16x128xf32>
    %67 = arith.addf %65, %66 : vector<16x128xf32>
    %cst_27 = arith.constant 5.000000e-01 : f32
    %68 = vector.broadcast %cst_27 : f32 to vector<16x128xf32>
    %69 = arith.mulf %68, %67 : vector<16x128xf32>
    %70 = math.tanh %69 : vector<16x128xf32>
    %cst_28 = arith.constant 5.000000e-01 : f32
    %71 = vector.broadcast %cst_28 : f32 to vector<16x128xf32>
    %72 = arith.mulf %71, %70 : vector<16x128xf32>
    %cst_29 = arith.constant 5.000000e-01 : f32
    %73 = vector.broadcast %cst_29 : f32 to vector<16x128xf32>
    %74 = arith.addf %72, %73 : vector<16x128xf32>
    %75 = vector.broadcast %22 : f32 to vector<16x128xf32>
    %76 = arith.mulf %74, %75 : vector<16x128xf32>
    %77 = arith.addf %63, %76 : vector<16x128xf32>
    %78 = vector.broadcast %3 : f32 to vector<16x128xf32>
    %79 = arith.mulf %34, %78 : vector<16x128xf32>
    %80 = vector.broadcast %13 : f32 to vector<16x128xf32>
    %81 = arith.addf %79, %80 : vector<16x128xf32>
    %cst_30 = arith.constant 5.000000e-01 : f32
    %82 = vector.broadcast %cst_30 : f32 to vector<16x128xf32>
    %83 = arith.mulf %82, %81 : vector<16x128xf32>
    %84 = math.tanh %83 : vector<16x128xf32>
    %cst_31 = arith.constant 5.000000e-01 : f32
    %85 = vector.broadcast %cst_31 : f32 to vector<16x128xf32>
    %86 = arith.mulf %85, %84 : vector<16x128xf32>
    %cst_32 = arith.constant 5.000000e-01 : f32
    %87 = vector.broadcast %cst_32 : f32 to vector<16x128xf32>
    %88 = arith.addf %86, %87 : vector<16x128xf32>
    %89 = vector.broadcast %23 : f32 to vector<16x128xf32>
    %90 = arith.mulf %88, %89 : vector<16x128xf32>
    %91 = arith.addf %77, %90 : vector<16x128xf32>
    %92 = vector.broadcast %4 : f32 to vector<16x128xf32>
    %93 = arith.mulf %34, %92 : vector<16x128xf32>
    %94 = vector.broadcast %14 : f32 to vector<16x128xf32>
    %95 = arith.addf %93, %94 : vector<16x128xf32>
    %cst_33 = arith.constant 5.000000e-01 : f32
    %96 = vector.broadcast %cst_33 : f32 to vector<16x128xf32>
    %97 = arith.mulf %96, %95 : vector<16x128xf32>
    %98 = math.tanh %97 : vector<16x128xf32>
    %cst_34 = arith.constant 5.000000e-01 : f32
    %99 = vector.broadcast %cst_34 : f32 to vector<16x128xf32>
    %100 = arith.mulf %99, %98 : vector<16x128xf32>
    %cst_35 = arith.constant 5.000000e-01 : f32
    %101 = vector.broadcast %cst_35 : f32 to vector<16x128xf32>
    %102 = arith.addf %100, %101 : vector<16x128xf32>
    %103 = vector.broadcast %24 : f32 to vector<16x128xf32>
    %104 = arith.mulf %102, %103 : vector<16x128xf32>
    %105 = arith.addf %91, %104 : vector<16x128xf32>
    %106 = vector.broadcast %5 : f32 to vector<16x128xf32>
    %107 = arith.mulf %34, %106 : vector<16x128xf32>
    %108 = vector.broadcast %15 : f32 to vector<16x128xf32>
    %109 = arith.addf %107, %108 : vector<16x128xf32>
    %cst_36 = arith.constant 5.000000e-01 : f32
    %110 = vector.broadcast %cst_36 : f32 to vector<16x128xf32>
    %111 = arith.mulf %110, %109 : vector<16x128xf32>
    %112 = math.tanh %111 : vector<16x128xf32>
    %cst_37 = arith.constant 5.000000e-01 : f32
    %113 = vector.broadcast %cst_37 : f32 to vector<16x128xf32>
    %114 = arith.mulf %113, %112 : vector<16x128xf32>
    %cst_38 = arith.constant 5.000000e-01 : f32
    %115 = vector.broadcast %cst_38 : f32 to vector<16x128xf32>
    %116 = arith.addf %114, %115 : vector<16x128xf32>
    %117 = vector.broadcast %25 : f32 to vector<16x128xf32>
    %118 = arith.mulf %116, %117 : vector<16x128xf32>
    %119 = arith.addf %105, %118 : vector<16x128xf32>
    %120 = vector.broadcast %6 : f32 to vector<16x128xf32>
    %121 = arith.mulf %34, %120 : vector<16x128xf32>
    %122 = vector.broadcast %16 : f32 to vector<16x128xf32>
    %123 = arith.addf %121, %122 : vector<16x128xf32>
    %cst_39 = arith.constant 5.000000e-01 : f32
    %124 = vector.broadcast %cst_39 : f32 to vector<16x128xf32>
    %125 = arith.mulf %124, %123 : vector<16x128xf32>
    %126 = math.tanh %125 : vector<16x128xf32>
    %cst_40 = arith.constant 5.000000e-01 : f32
    %127 = vector.broadcast %cst_40 : f32 to vector<16x128xf32>
    %128 = arith.mulf %127, %126 : vector<16x128xf32>
    %cst_41 = arith.constant 5.000000e-01 : f32
    %129 = vector.broadcast %cst_41 : f32 to vector<16x128xf32>
    %130 = arith.addf %128, %129 : vector<16x128xf32>
    %131 = vector.broadcast %26 : f32 to vector<16x128xf32>
    %132 = arith.mulf %130, %131 : vector<16x128xf32>
    %133 = arith.addf %119, %132 : vector<16x128xf32>
    %134 = vector.broadcast %7 : f32 to vector<16x128xf32>
    %135 = arith.mulf %34, %134 : vector<16x128xf32>
    %136 = vector.broadcast %17 : f32 to vector<16x128xf32>
    %137 = arith.addf %135, %136 : vector<16x128xf32>
    %cst_42 = arith.constant 5.000000e-01 : f32
    %138 = vector.broadcast %cst_42 : f32 to vector<16x128xf32>
    %139 = arith.mulf %138, %137 : vector<16x128xf32>
    %140 = math.tanh %139 : vector<16x128xf32>
    %cst_43 = arith.constant 5.000000e-01 : f32
    %141 = vector.broadcast %cst_43 : f32 to vector<16x128xf32>
    %142 = arith.mulf %141, %140 : vector<16x128xf32>
    %cst_44 = arith.constant 5.000000e-01 : f32
    %143 = vector.broadcast %cst_44 : f32 to vector<16x128xf32>
    %144 = arith.addf %142, %143 : vector<16x128xf32>
    %145 = vector.broadcast %27 : f32 to vector<16x128xf32>
    %146 = arith.mulf %144, %145 : vector<16x128xf32>
    %147 = arith.addf %133, %146 : vector<16x128xf32>
    %148 = vector.broadcast %8 : f32 to vector<16x128xf32>
    %149 = arith.mulf %34, %148 : vector<16x128xf32>
    %150 = vector.broadcast %18 : f32 to vector<16x128xf32>
    %151 = arith.addf %149, %150 : vector<16x128xf32>
    %cst_45 = arith.constant 5.000000e-01 : f32
    %152 = vector.broadcast %cst_45 : f32 to vector<16x128xf32>
    %153 = arith.mulf %152, %151 : vector<16x128xf32>
    %154 = math.tanh %153 : vector<16x128xf32>
    %cst_46 = arith.constant 5.000000e-01 : f32
    %155 = vector.broadcast %cst_46 : f32 to vector<16x128xf32>
    %156 = arith.mulf %155, %154 : vector<16x128xf32>
    %cst_47 = arith.constant 5.000000e-01 : f32
    %157 = vector.broadcast %cst_47 : f32 to vector<16x128xf32>
    %158 = arith.addf %156, %157 : vector<16x128xf32>
    %159 = vector.broadcast %28 : f32 to vector<16x128xf32>
    %160 = arith.mulf %158, %159 : vector<16x128xf32>
    %161 = arith.addf %147, %160 : vector<16x128xf32>
    %162 = vector.broadcast %9 : f32 to vector<16x128xf32>
    %163 = arith.mulf %34, %162 : vector<16x128xf32>
    %164 = vector.broadcast %19 : f32 to vector<16x128xf32>
    %165 = arith.addf %163, %164 : vector<16x128xf32>
    %cst_48 = arith.constant 5.000000e-01 : f32
    %166 = vector.broadcast %cst_48 : f32 to vector<16x128xf32>
    %167 = arith.mulf %166, %165 : vector<16x128xf32>
    %168 = math.tanh %167 : vector<16x128xf32>
    %cst_49 = arith.constant 5.000000e-01 : f32
    %169 = vector.broadcast %cst_49 : f32 to vector<16x128xf32>
    %170 = arith.mulf %169, %168 : vector<16x128xf32>
    %cst_50 = arith.constant 5.000000e-01 : f32
    %171 = vector.broadcast %cst_50 : f32 to vector<16x128xf32>
    %172 = arith.addf %170, %171 : vector<16x128xf32>
    %173 = vector.broadcast %29 : f32 to vector<16x128xf32>
    %174 = arith.mulf %172, %173 : vector<16x128xf32>
    %175 = arith.addf %161, %174 : vector<16x128xf32>
    %176 = arith.index_cast %32 : i32 to index
    %c0_51 = arith.constant 0 : index
    %177 = vector.load %arg6[%176, %c0_51] : memref<16x128xf32, #tpu.memory_space<vmem>>, vector<16x128xf32>
    tpu.vector_store %arg6[%176, %c0_51], %175 {strides = array<i32>} : memref<16x128xf32, #tpu.memory_space<vmem>>, vector<16x128xf32>,
    %c1_i32 = arith.constant 1 : i32
    return
  }
  func.func @transform_0(%arg0: i32) -> (i32, i32) {
    %c0_i32 = arith.constant 0 : i32
    %c0_i32_0 = arith.constant 0 : i32
    return %arg0, %c0_i32 : i32, i32
  }
  func.func @transform_1(%arg0: i32) -> i32 {
    %c0_i32 = arith.constant 0 : i32
    %c0_i32_0 = arith.constant 0 : i32
    return %c0_i32 : i32
  }
  func.func @transform_2(%arg0: i32) -> i32 {
    %c0_i32 = arith.constant 0 : i32
    %c0_i32_0 = arith.constant 0 : i32
    return %c0_i32 : i32
  }
  func.func @transform_3(%arg0: i32) -> i32 {
    %c0_i32 = arith.constant 0 : i32
    %c0_i32_0 = arith.constant 0 : i32
    return %c0_i32 : i32
  }
  func.func @transform_4(%arg0: i32) -> i32 {
    %c0_i32 = arith.constant 0 : i32
    %c0_i32_0 = arith.constant 0 : i32
    return %c0_i32 : i32
  }
  func.func @transform_5(%arg0: i32) -> (i32, i32) {
    %c0_i32 = arith.constant 0 : i32
    %c0_i32_0 = arith.constant 0 : i32
    return %arg0, %c0_i32 : i32, i32
  }
}

</mosaic_0001>

<bundles_post_ra>
// kernel: tpu_custom_call.1
= control target key start
LH: loop header
LB: loop body
LE: loop exit
PB: predicated region body
PF: predicated region fallthrough
CT: control target
= control target key end

     0   :  { %s1298_s0 = inlined_call_operand.hbm [shape: f32[32,128], index: 0, kind: input, shape index: {}]   ;;  %s1299_s1 = inlined_call_operand.vmem [shape: f32[10], index: 1, kind: input, shape index: {}]   ;;  %s1300_s2 = inlined_call_operand.vmem [shape: f32[10], index: 2, kind: input, shape index: {}]   ;;  %s1301_s3 = inlined_call_operand.vmem [shape: f32[10], index: 3, kind: input, shape index: {}]   ;;  %s1302_s4 = inlined_call_operand.<no memory space> [shape: f32[1], index: 4, kind: input, shape index: {}]   ;;  %s1303_s5 = inlined_call_operand.hbm [shape: f32[32,128], index: 5, kind: output, shape index: {}]  }
   0x1   :  { %10 = sst [smem:[#allocation2]] %s1302_s4 }
   0x2   :  { %11 = vsyncpa [#allocation4], 0 }
   0x3   :  { %13 = vsyncpa [#allocation4 + $0x1], 0 }
   0x4   :  { %14 = vsyncpa [#allocation6], 0 }
   0x5   :  { %15 = vsyncpa [#allocation9], 0 }
   0x6   :  { %16 = vsyncpa [#allocation5], 0 }
   0x7   :  { %18 = vsyncpa [#allocation5 + $0x1], 0  ;;  %s992_s20 = smov 0   ;;  %s994_s21 = smov 0  }
   0x8   :  { %s996_s22 = smov 0   ;;  %s998_s23 = smov 0  }
   0x9 LB: > { %s1013_s4 = sadd.s32 4294967295, %s948_s23   ;;  %s629_s24 = sadd.s32 4294967294, %s948_s23   ;;  %s948_s23 = sphi %s998_s23, %s1325_s23   ;;  %s944_s22 = sphi %s996_s22, %s1324_s22   ;;  %s940_s21 = sphi %s994_s21, %s1323_s21   ;;  %s936_s20 = sphi %s992_s20, %s1322_s20  }
   0xa   : > { %p44_p0 = scmp.ne.s32.totalorder %s940_s21, %s936_s20  ;;  %p1304_p1 = scmp.eq.s32.totalorder %s1013_s4, 0 }
   0xb   : > { %p158_p3 = scmp.eq.s32.totalorder %s629_s24, 1  ;;  %p630_p5 = scmp.ge.s32.totalorder %s948_s23, 1 }
   0xc   : > { %p1022_p4 = por %p1304_p1, %p44_p0  ;;  %p165_p7 = scmp.lt.s32.totalorder %s948_s23, 3 }
   0xd   : > { %p1027_p6 = por %p158_p3, %p44_p0  ;;  %s189_s29 = sshll.u32 %s1300_s2, 4  ;;  %s190_s29 = int_to_ptr.vmem [resolvable:$true] %s189_s29 }
   0xe   : > { %s1307_s25 = scalar_select %p1022_p4, 1, 0 }
   0xf   : > { %s1308_s26 = scalar_select %p1027_p6, 1, 0 }
  0x10   : > { %p1035_p8 = pnand %p630_p5, %p165_p7  ;;  %s178_s8 = sshll.u32 %s1299_s1, 4  ;;  %s179_s8 = int_to_ptr.vmem [resolvable:$true] %s178_s8 }
  0x11   : > { %s200_s12 = sshll.u32 %s1301_s3, 4  ;;  %s799_s13 = scalar_lea.vmem %s190_s29, 16  ;;  %s1054_s12 = int_to_ptr.vmem [resolvable:$true] %s200_s12 }
  0x12   : > { %s1309_s30 = scalar_select %p1035_p8, 1, 0 }
  0x13   : > { %p694_p10 = pneg %p1035_p8  ;;  %p800_p12 = scmp.ne.s32.totalorder %s190_s29, %s799_s13 }
  0x14   : > { %p807_p5 = scmp.lt.s32.totalorder %s190_s29, %s190_s29  ;;  %p808_p7 = scmp.lt.s32.totalorder %s799_s13, %s799_s13 }
  0x15   : > { %p1047_p11 = pnand %p694_p10, %p1304_p1 }
  0x16   : > { %p809_p10 = por %p808_p7, %p807_p5 }
  0x17   : > { %p801_p13 = pneg %p1047_p11 }
  0x19   : > { %p802_p0 = pnand %p801_p13, %p800_p12 }
  0x1b   : > { %p803_p3 = pneg %p802_p0 }
  0x1d   : > { %p810_p9 = pnand %p809_p10, %p803_p3 }
  0x1f   : > { %813 = shalt.err (!%p810_p9)
}
  0x20   : > { %s950_s14 = smov [#allocation8]   ;;  %s814_s15 = scalar_lea.vmem %s179_s8, 16 }
  0x21   : > { %700 = dma.vmem_to_smem (!%p1047_p11), %s190_s29, 16, %s950_s14, [#allocation9]  }
  0x22   : > { %p815_p1 = scmp.ne.s32.totalorder %s179_s8, %s814_s15  ;;  %p822_p4 = scmp.lt.s32.totalorder %s179_s8, %s179_s8 }
  0x23   : > { %p823_p8 = scmp.lt.s32.totalorder %s814_s15, %s814_s15 }
  0x24   : > { %p817_p2 = pnand %p815_p1, %p801_p13 }
  0x25   : > { %p824_p12 = por %p823_p8, %p822_p4 }
  0x26   : > { %p818_p6 = pneg %p817_p2 }
  0x28   : > { %p825_p0 = pnand %p824_p12, %p818_p6 }
  0x2a   : > { %828 = shalt.err (!%p825_p0)
}
  0x2b   : > { %s951_s16 = smov [#allocation7]   ;;  %s829_s17 = scalar_lea.vmem %s1054_s12, 16 }
  0x2c   : > { %697 = dma.vmem_to_smem (!%p1047_p11), %s179_s8, 16, %s951_s16, [#allocation6]  }
  0x2d   : > { %p830_p9 = scmp.ne.s32.totalorder %s1054_s12, %s829_s17  ;;  %p837_p2 = scmp.lt.s32.totalorder %s1054_s12, %s1054_s12 }
  0x2e   : > { %p838_p5 = scmp.lt.s32.totalorder %s829_s17, %s829_s17 }
  0x2f   : > { %p832_p3 = pnand %p830_p9, %p801_p13 }
  0x30   : > { %p839_p4 = por %p838_p5, %p837_p2 }
  0x31   : > { %p833_p1 = pneg %p832_p3 }
  0x33   : > { %p840_p6 = pnand %p839_p4, %p833_p1 }
  0x35   : > { %843 = shalt.err (!%p840_p6)
}
  0x36   : > { %s952_s18 = smov [#allocation10]   ;;  %s1079_s19 = sadd.s32 1, %s948_s23  }
  0x37   : > { %703 = dma.vmem_to_smem (!%p1047_p11), %s1054_s12, 16, %s952_s18, [#allocation9]  }
  0x38   : > { %s28_s24 = ssub.s32 %s948_s23, %s1079_s19  ;;  %s31_s27 = sadd.s32 1, %s944_s22 }
  0x39   : > { %p29_p8 = scmp.eq.s32.totalorder %s28_s24, 0  ;;  %p38_p13 = scmp.ne.s32.totalorder %s944_s22, %s940_s21 }
  0x3a   : > { %p39_p7 = scmp.eq.s32.totalorder %s948_s23, 0  ;;  %p715_p10 = scmp.lt.s32.totalorder %s948_s23, 2 }
  0x3b   : > { %s1089_s28 = scalar_select %p29_p8, %s944_s22, %s31_s27  }
  0x3c   : > { %p40_p12 = por %p39_p7, %p38_p13  ;;  %p1311_p0 = scmp.eq.s32.totalorder %s1013_s4, 1 }
  0x3d   : > { %s214_s6 = sand.u32 1, %s944_s22   ;;  %s676_s7 = sshll.u32 %s948_s23, 8 }
  0x3e   : > { %p1093_p9 = por %p1311_p0, %p38_p13  ;;  %s635_s8 = sshll.u32 %s214_s6, 4 }
  0x3f   : > { %s1102_s11 = scalar_lea.hbm %s1298_s0, %s676_s7  ;;  %s218_s12 = scalar_lea.vmem [#allocation3], %s635_s8 }
  0x40   : > { %s225_s13 = sshll.u32 %s218_s12, 4  ;;  %p1104_p11 = pnand %p715_p10, %p40_p12  ;;  %s1108_s13 = int_to_ptr.vmem [resolvable:$true] %s225_s13 }
  0x41   : > { %s1110_s15 = scalar_lea.sflag [#allocation4], %s214_s6  ;;  %s844_s16 = scalar_lea.hbm %s1102_s11, 256 }
  0x42   : > { %p845_p3 = scmp.ne.s32.totalorder %s1102_s11, %s844_s16  ;;  %p846_p1 = pneg %p1104_p11 }
  0x43   : > { %s849_s24 = scalar_lea.hbm %s1298_s0, 512  ;;  %p850_p4 = scmp.lt.u32.totalorder %s1102_s11, %s1298_s0 }
  0x44   : > { %p847_p2 = pnand %p846_p1, %p845_p3  ;;  %p851_p6 = scmp.lt.u32.totalorder %s849_s24, %s844_s16 }
  0x45   : > { %p853_p13 = scmp.lt.u32.totalorder %s844_s16, %s1102_s11 }
  0x46   : > { %p848_p5 = pneg %p847_p2  ;;  %p852_p8 = por %p851_p6, %p850_p4 }
  0x48   : > { %p854_p7 = por %p853_p13, %p852_p8 }
  0x4a   : > { %p855_p10 = pnand %p854_p7, %p848_p5 }
  0x4c   : > { %858 = shalt.err (!%p855_p10)
}
  0x4d   : > { %s859_s6 = scalar_lea.vmem %s1108_s13, 256  ;;  %s953_s8 = smov [#allocation3]  }
  0x4e   : > { %p860_p12 = scmp.ne.s32.totalorder %s1108_s13, %s859_s6  ;;  %s864_s9 = sshll.u32 %s953_s8, 4  ;;  %s865_s9 = int_to_ptr.vmem [resolvable:$false] %s864_s9 }
  0x4f   : > { %s866_s10 = scalar_lea.vmem %s865_s9, 512  ;;  %p867_p2 = scmp.lt.s32.totalorder %s1108_s13, %s865_s9 }
  0x50   : > { %p862_p0 = pnand %p860_p12, %p846_p1  ;;  %p868_p4 = scmp.lt.s32.totalorder %s866_s10, %s859_s6 }
  0x52   : > { %p863_p3 = pneg %p862_p0  ;;  %p869_p6 = por %p868_p4, %p867_p2 }
  0x54   : > { %p870_p8 = pnand %p869_p6, %p863_p3 }
  0x56   : > { %873 = shalt.err (!%p870_p8)
}
  0x57   : > { %s954_s12 = smov 128   ;;  %s955_s16 = smov 8  }
  0x58   : > { %707 = dma.hbm_to_vmem [thread:$0]  (!%p1104_p11), %s1102_s11, 256, %s1108_s13, %s1110_s15, %s954_s12, %s954_s12, %s955_s16  }
  0x59   : > { %p1314_p1 = scmp.ne.s32.totalorder %s1309_s30, 0 }
  0x5a   : > { %s1141_s17 = sand.u32 (!%p1314_p1), 1, %s940_s21   ;;  %p1315_p5 = scmp.ne.s32.totalorder (!%p1314_p1), %s1307_s25, 0 }
  0x5b   : > { %237 = sbr.rel (%p1314_p1) target bundleno = 190 (0xbe), region = 40  ;;  %s639_s18 = sshll.u32 (!%p1314_p1), %s1141_s17, 4 }
  0x5c   : > { %s240_s24 = scalar_lea.sflag (!%p1314_p1), [#allocation4], %s1141_s17  ;;  %s243_s27 = scalar_lea.vmem (!%p1314_p1), [#allocation3], %s639_s18 }
  0x62   : > { %919 = dma.done.wait (%p1315_p5), %s240_s24, 256  }
  0x63   : > { %921 = vsyncadd (%p1315_p5), %s240_s24, 4294967040  ;;  %p1316_p11 = scmp.eq.s32.totalorder %s1013_s4, 0 }
  0x65   : > { %923 = dma.done.wait (%p1316_p11), [#allocation6], 16   ;;  %p1317_p13 = pmov %p1316_p11 }
  0x66   : > { %p1318_p7 = pmov %p1316_p11 }
  0x67   : > { %925 = vsyncadd (%p1317_p13), [#allocation6], 4294967280 }
  0x68   : > { %927 = dma.done.wait (%p1318_p7), [#allocation9], 32   ;;  %p1319_p10 = pmov %p1318_p7 }
  0x6a   : > { %929 = vsyncadd (%p1319_p10), [#allocation9], 4294967264 }
  0x6b   : > { %260 = sfence }
  0x6c   : > { %s285_s30 = sld [smem:[#allocation7]]  ;;  %s644_s11 = sld [smem:[#allocation7 + $0x1]]  ;;  %v1161_v0 = vld [vmem:[%s243_s27] sm:$0xff]  ;;  %v1163_v1 = vld [vmem:[%s243_s27 + $0x8] sm:$0xff] }
  0x6d   : > { %s645_s13 = sld [smem:[#allocation7 + $0x2]]  ;;  %s646_s14 = sld [smem:[#allocation7 + $0x3]] }
  0x6e   : > { %s647_s15 = sld [smem:[#allocation7 + $0x4]]  ;;  %s1159_s25 = sld [smem:[#allocation7 + $0x5]] }
  0x6f   : > { %s295_s7 = sld [smem:[#allocation8]]  ;;  %s653_s6 = sld [smem:[#allocation8 + $0x1]] }
  0x70   : > { %s654_s8 = sld [smem:[#allocation8 + $0x2]]  ;;  %s1165_s9 = sld [smem:[#allocation8 + $0x3]] }
  0x71   : > { %s1167_s10 = sld [smem:[#allocation8 + $0x4]]  ;;  %s1173_s12 = sld [smem:[#allocation7 + $0x6]] }
  0x72   : > { %v319_v2 = vstv %s285_s30  ;;  %v338_v3 = vstv %s644_s11  ;;  %s1179_s16 = sld [smem:[#allocation8 + $0x5]]  ;;  %s1186_s24 = sld [smem:[#allocation7 + $0x7]] }
  0x73   : > { %v357_v4 = vstv %s645_s13  ;;  %v320_v5 = vmul.f32 %v319_v2, %v1161_v0  ;;  %v321_v6 = vmul.f32 %v319_v2, %v1163_v1  ;;  %v339_v7 = vmul.f32 %v338_v3, %v1161_v0  ;;  %s1188_s27 = sld [smem:[#allocation8 + $0x6]]  ;;  %s1191_s30 = sld [smem:[#allocation8 + $0x7]] }
  0x74   : > { %v340_v8 = vmul.f32 %v338_v3, %v1163_v1  ;;  %v358_v9 = vmul.f32 %v357_v4, %v1161_v0  ;;  %v359_v10 = vmul.f32 %v357_v4, %v1163_v1  ;;  %v376_v11 = vstv %s646_s14  ;;  %s1195_s11 = sld [smem:[#allocation10]]  ;;  %s1197_s13 = sld [smem:[#allocation10 + $0x1]] }
  0x75   : > { %v395_v12 = vstv %s647_s15  ;;  %v377_v13 = vmul.f32 %v376_v11, %v1161_v0  ;;  %v414_v14 = vstv %s1159_s25  ;;  %v322_v15 = vstv %s295_s7  ;;  %s1200_s14 = sld [smem:[#allocation10 + $0x2]]  ;;  %s1203_s15 = sld [smem:[#allocation2]] }
  0x76   : > { %v378_v16 = vmul.f32 %v376_v11, %v1163_v1  ;;  %v396_v17 = vmul.f32 %v395_v12, %v1161_v0  ;;  %v397_v18 = vmul.f32 %v395_v12, %v1163_v1  ;;  %v323_v19 = vadd.f32 %v322_v15, %v320_v5  ;;  %s1211_s25 = sld [smem:[#allocation7 + $0x8]]  ;;  %s1213_s7 = sld [smem:[#allocation10 + $0x3]] }
  0x77   : > { %v324_v20 = vadd.f32 %v322_v15, %v321_v6  ;;  %v341_v21 = vstv %s653_s6  ;;  %v360_v22 = vstv %s654_s8  ;;  %v379_v29 = vstv %s1165_s9  ;;  %s1219_s6 = sld [smem:[#allocation8 + $0x8]]  ;;  %s1221_s8 = sld [smem:[#allocation10 + $0x4]] }
  0x78   : > { %v342_v23 = vadd.f32 %v341_v21, %v339_v7  ;;  %v343_v24 = vadd.f32 %v341_v21, %v340_v8  ;;  %v361_v25 = vadd.f32 %v360_v22, %v358_v9  ;;  %v362_v26 = vadd.f32 %v360_v22, %v359_v10  ;;  %s1225_s9 = sld [smem:[#allocation10 + $0x5]] }
  0x79   : > { %v325_v27 = vmul.f32 0.5, %v323_v19  ;;  %v326_v28 = vmul.f32 0.5, %v324_v20  ;;  %v398_v30 = vstv %s1167_s10  ;;  %v380_v33 = vadd.f32 %v379_v29, %v377_v13  ;;  %s1227_s10 = sld [smem:[#allocation7 + $0x9]] }
  0x7a   : > { %v344_v31 = vmul.f32 0.5, %v342_v23  ;;  %v345_v32 = vmul.f32 0.5, %v343_v24  ;;  %v381_v34 = vadd.f32 %v379_v29, %v378_v16  ;;  %v363_v35 = vmul.f32 0.5, %v361_v25 }
  0x7b   : > { %759 = vtanh.f32 %v325_v27  ;;  %v415_v36 = vmul.f32 %v414_v14, %v1161_v0  ;;  %v364_v37 = vmul.f32 0.5, %v362_v26  ;;  %v416_v38 = vmul.f32 %v414_v14, %v1163_v1 }
  0x7c   : > { %761 = vtanh.f32 %v326_v28  ;;  %v433_v39 = vstv %s1173_s12  ;;  %v382_v40 = vmul.f32 0.5, %v380_v33  ;;  %v399_v41 = vadd.f32 %v398_v30, %v396_v17  ;;  %s1231_s12 = sld [smem:[#allocation8 + $0x9]] }
  0x7d   : > { %763 = vtanh.f32 %v344_v31  ;;  %v383_v42 = vmul.f32 0.5, %v381_v34  ;;  %v400_v43 = vadd.f32 %v398_v30, %v397_v18  ;;  %v417_v44 = vstv %s1179_s16  ;;  %s1233_s16 = sld [smem:[#allocation10 + $0x6]] }
  0x7e   : > { %765 = vtanh.f32 %v345_v32  ;;  %v401_v45 = vmul.f32 0.5, %v399_v41  ;;  %v418_v46 = vadd.f32 %v417_v44, %v415_v36  ;;  %v434_v47 = vmul.f32 %v433_v39, %v1161_v0 }
  0x7f   : > { %767 = vtanh.f32 %v363_v35  ;;  %v402_v48 = vmul.f32 0.5, %v400_v43  ;;  %v419_v49 = vadd.f32 %v417_v44, %v416_v38  ;;  %v435_v50 = vmul.f32 %v433_v39, %v1163_v1 }
  0x80   : > { %769 = vtanh.f32 %v364_v37  ;;  %v420_v51 = vmul.f32 0.5, %v418_v46  ;;  %v436_v52 = vstv %s1188_s27  ;;  %v452_v53 = vstv %s1186_s24  ;;  %s1239_s24 = sld [smem:[#allocation10 + $0x7]]  ;;  %s669_s27 = sld [smem:[#allocation10 + $0x8]] }
  0x81   : > { %771 = vtanh.f32 %v382_v40  ;;  %v437_v54 = vadd.f32 %v436_v52, %v434_v47  ;;  %v438_v55 = vadd.f32 %v436_v52, %v435_v50  ;;  %v453_v56 = vmul.f32 %v452_v53, %v1161_v0 }
  0x82   : > { %773 = vtanh.f32 %v383_v42  ;;  %v421_v57 = vmul.f32 0.5, %v419_v49  ;;  %v454_v58 = vmul.f32 %v452_v53, %v1163_v1  ;;  %v455_v59 = vstv %s1191_s30  ;;  %s670_s30 = sld [smem:[#allocation10 + $0x9]] }
  0x83   : > { %775 = vtanh.f32 %v401_v45  ;;  %v439_v61 = vmul.f32 0.5, %v437_v54  ;;  %v456_v62 = vadd.f32 %v455_v59, %v453_v56  ;;  %v333_v3 = vstv %s1195_s11  ;;  %s677_s11 = sshll.u32 %s1013_s4, 8  ;;  %s512_s4 = scalar_lea.sflag [#allocation5], %s1141_s17 }
  0x84   : > { %777 = vtanh.f32 %v402_v48  ;;  %v352_v4 = vstv %s1197_s13  ;;  %v440_v5 = vmul.f32 0.5, %v438_v55  ;;  %v371_v8 = vstv %s1200_s14  ;;  %s282_s13 = scalar_lea.vmem [#allocation11], %s639_s18  ;;  %s956_s18 = smov [#allocation11]  }
  0x85   : > { %v760_v60 = vpop.eup %759  ;;  %779 = vtanh.f32 %v420_v51  ;;  %v457_v9 = vadd.f32 %v455_v59, %v454_v58  ;;  %v318_v11 = vstv %s1203_s15  ;;  %v458_v17 = vmul.f32 0.5, %v456_v62  ;;  %s525_s14 = sshll.u32 %s282_s13, 4  ;;  %s1254_s14 = int_to_ptr.vmem [resolvable:$true] %s525_s14 }
  0x86   : > { %v762_v63 = vpop.eup %761  ;;  %v329_v2 = vmul.f32 0.5, %v760_v60  ;;  %781 = vtanh.f32 %v421_v57  ;;  %v390_v38 = vstv %s1213_s7  ;;  %v471_v39 = vstv %s1211_s25  ;;  %s1252_s7 = scalar_lea.hbm %s1303_s5, %s677_s11 }
  0x87   : > { %v764_v6 = vpop.eup %763  ;;  %v330_v7 = vmul.f32 0.5, %v762_v63  ;;  %783 = vtanh.f32 %v439_v61  ;;  %v459_v26 = vmul.f32 0.5, %v457_v9  ;;  %v472_v50 = vmul.f32 %v471_v39, %v1161_v0 }
  0x88   : > { %v766_v10 = vpop.eup %765  ;;  %v331_v12 = vadd.f32 0.5, %v329_v2  ;;  %v348_v13 = vmul.f32 0.5, %v764_v6  ;;  %785 = vtanh.f32 %v440_v5  ;;  %v473_v51 = vmul.f32 %v471_v39, %v1163_v1 }
  0x89   : > { %v768_v14 = vpop.eup %767  ;;  %v332_v15 = vadd.f32 0.5, %v330_v7  ;;  %v349_v16 = vmul.f32 0.5, %v766_v10  ;;  %787 = vtanh.f32 %v458_v17  ;;  %v474_v56 = vstv %s1219_s6  ;;  %s874_s6 = scalar_lea.vmem %s1254_s14, 256 }
  0x8a   : > { %v770_v18 = vpop.eup %769  ;;  %v334_v19 = vmul.f32 %v333_v3, %v331_v12  ;;  %v350_v20 = vadd.f32 0.5, %v348_v13  ;;  %v367_v21 = vmul.f32 0.5, %v768_v14  ;;  %789 = vtanh.f32 %v459_v26  ;;  %p875_p12 = scmp.ne.s32.totalorder %s1254_s14, %s874_s6 }
  0x8b   : > { %v772_v22 = vpop.eup %771  ;;  %v335_v23 = vmul.f32 %v333_v3, %v332_v15  ;;  %v351_v24 = vadd.f32 0.5, %v349_v16  ;;  %v368_v25 = vmul.f32 0.5, %v770_v18  ;;  %v409_v60 = vstv %s1221_s8  ;;  %s878_s8 = sshll.u32 %s956_s18, 4  ;;  %s879_s8 = int_to_ptr.vmem [resolvable:$false] %s878_s8 }
  0x8c   : > { %v774_v27 = vpop.eup %773  ;;  %v336_v28 = vadd.f32 %v334_v19, %v318_v11  ;;  %v353_v29 = vmul.f32 %v352_v4, %v350_v20  ;;  %v369_v30 = vadd.f32 0.5, %v367_v21  ;;  %v386_v31 = vmul.f32 0.5, %v772_v22  ;;  %p876_p0 = pnand %p875_p12, %p1093_p9  ;;  %p881_p2 = scmp.lt.s32.totalorder %s1254_s14, %s879_s8 }
  0x8d   : > { %v776_v32 = vpop.eup %775  ;;  %v337_v33 = vadd.f32 %v335_v23, %v318_v11  ;;  %v354_v34 = vmul.f32 %v352_v4, %v351_v24  ;;  %v370_v35 = vadd.f32 0.5, %v368_v25  ;;  %v387_v36 = vmul.f32 0.5, %v774_v27 }
  0x8e   : > { %v778_v37 = vpop.eup %777  ;;  %v355_v40 = vadd.f32 %v353_v29, %v336_v28  ;;  %v372_v41 = vmul.f32 %v371_v8, %v369_v30  ;;  %v388_v42 = vadd.f32 0.5, %v386_v31  ;;  %v405_v43 = vmul.f32 0.5, %v776_v32  ;;  %p877_p3 = pneg %p876_p0 }
  0x8f   : > { %v356_v44 = vadd.f32 %v354_v34, %v337_v33  ;;  %v373_v45 = vmul.f32 %v371_v8, %v370_v35  ;;  %v389_v46 = vadd.f32 0.5, %v387_v36  ;;  %v780_v47 = vpop.eup %779  ;;  %v406_v48 = vmul.f32 0.5, %v778_v37 }
  0x90   : > { %v782_v49 = vpop.eup %781  ;;  %v374_v53 = vadd.f32 %v372_v41, %v355_v40  ;;  %v391_v54 = vmul.f32 %v390_v38, %v388_v42  ;;  %v407_v55 = vadd.f32 0.5, %v405_v43  ;;  %v424_v61 = vmul.f32 0.5, %v780_v47 }
  0x91   : > { %v784_v52 = vpop.eup %783  ;;  %v375_v58 = vadd.f32 %v373_v45, %v356_v44  ;;  %v392_v59 = vmul.f32 %v390_v38, %v389_v46  ;;  %v408_v62 = vadd.f32 0.5, %v406_v48  ;;  %v425_v63 = vmul.f32 0.5, %v782_v49 }
  0x92   : > { %v786_v57 = vpop.eup %785  ;;  %v475_v2 = vadd.f32 %v474_v56, %v472_v50  ;;  %v393_v3 = vadd.f32 %v391_v54, %v374_v53  ;;  %v410_v4 = vmul.f32 %v409_v60, %v407_v55  ;;  %v428_v5 = vstv %s1225_s9  ;;  %s880_s9 = scalar_lea.vmem %s879_s8, 512 }
  0x93   : > { %v476_v6 = vadd.f32 %v474_v56, %v473_v51  ;;  %v394_v7 = vadd.f32 %v392_v59, %v375_v58  ;;  %v426_v8 = vadd.f32 0.5, %v424_v61  ;;  %v443_v9 = vmul.f32 0.5, %v784_v52  ;;  %v788_v15 = vpop.eup %787  ;;  %p882_p4 = scmp.lt.s32.totalorder %s880_s9, %s874_s6 }
  0x94   : > { %v477_v10 = vmul.f32 0.5, %v475_v2  ;;  %v411_v11 = vmul.f32 %v409_v60, %v408_v62  ;;  %v427_v12 = vadd.f32 0.5, %v425_v63  ;;  %v490_v14 = vstv %s1227_s10  ;;  %v790_v19 = vpop.eup %789 }
  0x95   : > { %v478_v13 = vmul.f32 0.5, %v476_v6  ;;  %v444_v16 = vmul.f32 0.5, %v786_v57  ;;  %v491_v17 = vmul.f32 %v490_v14, %v1161_v0  ;;  %v492_v18 = vmul.f32 %v490_v14, %v1163_v1  ;;  %p883_p6 = por %p882_p4, %p881_p2 }
  0x96   : > { %791 = vtanh.f32 %v477_v10  ;;  %v447_v20 = vstv %s1233_s16  ;;  %v493_v21 = vstv %s1231_s12  ;;  %v412_v22 = vadd.f32 %v410_v4, %v393_v3 }
  0x97   : > { %793 = vtanh.f32 %v478_v13  ;;  %v429_v23 = vmul.f32 %v428_v5, %v426_v8  ;;  %v494_v24 = vadd.f32 %v493_v21, %v491_v17  ;;  %v495_v25 = vadd.f32 %v493_v21, %v492_v18  ;;  %p884_p8 = pnand %p883_p6, %p877_p3 }
  0x98   : > { %v413_v26 = vadd.f32 %v411_v11, %v394_v7  ;;  %v430_v27 = vmul.f32 %v428_v5, %v427_v12  ;;  %v445_v28 = vadd.f32 0.5, %v443_v9  ;;  %v462_v29 = vmul.f32 0.5, %v788_v15 }
  0x99   : > { %v446_v30 = vadd.f32 0.5, %v444_v16  ;;  %v463_v31 = vmul.f32 0.5, %v790_v19  ;;  %v496_v32 = vmul.f32 0.5, %v494_v24  ;;  %v497_v0 = vmul.f32 0.5, %v495_v25 }
  0x9a   : > { %v431_v1 = vadd.f32 %v429_v23, %v412_v22  ;;  %v448_v33 = vmul.f32 %v447_v20, %v445_v28  ;;  %v464_v34 = vadd.f32 0.5, %v462_v29  ;;  %v432_v35 = vadd.f32 %v430_v27, %v413_v26 }
  0x9b   : > { %795 = vtanh.f32 %v496_v32  ;;  %v449_v36 = vmul.f32 %v447_v20, %v446_v30  ;;  %v465_v37 = vadd.f32 0.5, %v463_v31  ;;  %v466_v38 = vstv %s1239_s24 }
  0x9c   : > { %797 = vtanh.f32 %v497_v0  ;;  %v450_v41 = vadd.f32 %v448_v33, %v431_v1  ;;  %v467_v42 = vmul.f32 %v466_v38, %v464_v34  ;;  %v485_v47 = vstv %s669_s27 }
  0x9d   : > { %v451_v44 = vadd.f32 %v449_v36, %v432_v35  ;;  %v468_v45 = vmul.f32 %v466_v38, %v465_v37  ;;  %v504_v58 = vstv %s670_s30 }
  0x9e   : > { %v469_v50 = vadd.f32 %v467_v42, %v450_v41 }
  0x9f   : > { %v470_v53 = vadd.f32 %v468_v45, %v451_v44 }
  0xa0   : > { %v792_v39 = vpop.eup %791 }
  0xa1   : > { %v794_v40 = vpop.eup %793  ;;  %v481_v43 = vmul.f32 0.5, %v792_v39 }
  0xa2   : > { %v482_v46 = vmul.f32 0.5, %v794_v40 }
  0xa3   : > { %v483_v48 = vadd.f32 0.5, %v481_v43 }
  0xa4   : > { %v484_v49 = vadd.f32 0.5, %v482_v46 }
  0xa5   : > { %v486_v51 = vmul.f32 %v485_v47, %v483_v48  ;;  %v796_v52 = vpop.eup %795 }
  0xa6   : > { %v487_v54 = vmul.f32 %v485_v47, %v484_v49  ;;  %v798_v55 = vpop.eup %797  ;;  %v500_v56 = vmul.f32 0.5, %v796_v52 }
  0xa7   : > { %v501_v57 = vmul.f32 0.5, %v798_v55  ;;  %v488_v59 = vadd.f32 %v486_v51, %v469_v50 }
  0xa8   : > { %v502_v60 = vadd.f32 0.5, %v500_v56  ;;  %v489_v61 = vadd.f32 %v487_v54, %v470_v53 }
  0xa9   : > { %v503_v62 = vadd.f32 0.5, %v501_v57 }
  0xaa   : > { %v505_v63 = vmul.f32 %v504_v58, %v502_v60 }
  0xab   : > { %v506_v2 = vmul.f32 %v504_v58, %v503_v62 }
  0xac   : > { %v507_v3 = vadd.f32 %v505_v63, %v488_v59 }
  0xad   : > { %v508_v4 = vadd.f32 %v506_v2, %v489_v61 }
  0xae   : > { %509 = vst [vmem:[%s282_s13] sm:$0xff] %v507_v3 }
  0xaf   : > { %510 = vst [vmem:[%s282_s13 + $0x8] sm:$0xff] %v508_v4 }
  0xb0   : > { %887 = shalt.err (!%p884_p8)
}
  0xb1   : > { %s888_s10 = scalar_lea.hbm %s1252_s7, 256  ;;  %s892_s24 = scalar_lea.hbm %s1303_s5, 512 }
  0xb2   : > { %p889_p1 = scmp.ne.s32.totalorder %s1252_s7, %s888_s10  ;;  %p893_p13 = scmp.lt.u32.totalorder %s1252_s7, %s1303_s5 }
  0xb3   : > { %p894_p7 = scmp.lt.u32.totalorder %s892_s24, %s888_s10  ;;  %p896_p12 = scmp.lt.u32.totalorder %s888_s10, %s1252_s7 }
  0xb4   : > { %p890_p5 = pnand %p889_p1, %p1093_p9 }
  0xb5   : > { %p895_p10 = por %p894_p7, %p893_p13 }
  0xb6   : > { %p891_p11 = pneg %p890_p5 }
  0xb7   : > { %p897_p0 = por %p896_p12, %p895_p10 }
  0xb9   : > { %p898_p3 = pnand %p897_p0, %p891_p11 }
  0xbb   : > { %901 = shalt.err (!%p898_p3)
}
  0xbc   : > { %s957_s11 = smov 128   ;;  %s958_s13 = smov 8  }
  0xbd   : > { %692 = dma.vmem_to_hbm [thread:$0]  (%p1093_p9), %s1254_s14, 256, %s1252_s7, %s512_s4, %s957_s11, %s957_s11, %s958_s13  }
  0xbe PF: > { %s540_s15 = sand.u32 1, %s936_s20   ;;  %p1320_p2 = scmp.ne.s32.totalorder %s1308_s26, 0 }
  0xbf   : > { %p1321_p4 = scmp.ge.s32.totalorder %s948_s23, 2  ;;  %s541_s25 = scalar_lea.sflag [#allocation5], %s540_s15 }
  0xc1   : > { %p709_p6 = pnand %p1321_p4, %p1320_p2 }
  0xc3   : > { %931 = dma.done.wait (!%p709_p6), %s541_s25, 256  }
  0xc4   : > { %933 = vsyncadd (!%p709_p6), %s541_s25, 4294967040  ;;  %p21_p8 = scmp.ge.s32.totalorder %s1079_s19, 4   ;;  %s1322_s20 = smov %s940_s21 }
  0xc5   : > { %s1323_s21 = smov %s944_s22  ;;  %s1324_s22 = smov %s1089_s28 }
  0xc6   : > { %s1325_s23 = smov %s1079_s19  ;;  %23 = sbr.rel (!%p21_p8) target bundleno = 9 (0x9), region = 98 }
  0xcd   :  { %546 = vsyncpa [#allocation4], 1 }
  0xce   :  { %548 = vsyncpa [#allocation4 + $0x1], 1 }
  0xcf   :  { %549 = vsyncpa [#allocation5], 1 }
  0xd0   :  { %551 = vsyncpa [#allocation5 + $0x1], 1 }
  0xd1   :  { %552 = vsyncpa [#allocation6], 1 }
  0xd2   :  { %554 = vsyncpa [#allocation6 + $0x1], 1 }
  0xd3   :  { %555 = vsyncpa [#allocation9], 1 }

</bundles_post_ra>
